<compile_context>
chip_gen: v7x
topology: tpu7x:2x2x1
jax: 0.10.0
libtpu: 0.0.40
codegen_flags: <defaults>
</compile_context>

<pallas_src>
import functools

import jax
import jax.numpy as jnp
from jax import lax
from jax.experimental import pallas as pl
from jax.experimental.pallas import tpu as pltpu


def _round_up(x, m):
    return ((x + m - 1) // m) * m


def _chip_defaults():
    """Per-generation (tm, tv) targets and a VMEM cap (bytes)."""
    kind = ""
    try:
        kind = jax.devices()[0].device_kind.lower()
    except Exception:
        pass
    vmem_phys = None
    try:
        info = pltpu.get_tpu_info()
        vmem_phys = int(getattr(info, "vmem_capacity_bytes", 0)) or None
    except Exception:
        vmem_phys = None

    if "v7" in kind:
        tm_t, tv_t = 512, 512            # intensity knee ~310 FLOPs/byte; 64 MiB VMEM
        phys = vmem_phys or (64 << 20)
    elif "v6" in kind:
        tm_t, tv_t = 1024, 1024          # knee ~640 FLOPs/byte; 128 MiB VMEM
        phys = vmem_phys or (128 << 20)
    elif "v5" in kind:
        tm_t, tv_t = 256, 1024           # knee ~240 FLOPs/byte; spend VMEM on tv
        phys = vmem_phys or (128 << 20)
    else:
        tm_t, tv_t = 512, 512            # conservative default
        phys = vmem_phys or (64 << 20)
    cap = int(0.8 * phys)                # leave headroom for compiler scratch
    return tm_t, tv_t, cap


def _rmsnorm_kernel(x_ref, gamma_ref, o_ref, *, eps):
    # Qwen RMSNorm: normalize in f32, cast back to bf16, multiply by gamma.
    x = x_ref[...].astype(jnp.float32)
    inv = lax.rsqrt(jnp.mean(x * x, axis=-1, keepdims=True) + eps)
    o_ref[...] = (x * inv).astype(o_ref.dtype) * gamma_ref[...]


def _lm_head_kernel(xn_ref, w_ref, tok_ref, mval_ref, midx_ref, *,
                    vocab_size, masked):
    # xn_ref:   (TM, H)   bf16  normalized hidden tile (constant across vocab axis)
    # w_ref:    (H, TV)   bf16  lm_head weight tile (pre-transposed, zero-padded)
    # tok_ref:  (TM, 1)   int32 output: top-1 token id per token
    # mval_ref: (TM, 1)   f32   scratch: running max logit
    # midx_ref: (TM, 1)   int32 scratch: running argmax index
    j = pl.program_id(1)
    tv = w_ref.shape[1]

    @pl.when(j == 0)
    def _():
        mval_ref[...] = jnp.full_like(mval_ref, -jnp.inf)
        midx_ref[...] = jnp.zeros_like(midx_ref)

    # logits tile: (TM, TV) = xn @ w_tile, f32 accumulation on the MXU.
    logits = jnp.dot(xn_ref[...], w_ref[...],
                     preferred_element_type=jnp.float32)

    col = lax.broadcasted_iota(jnp.int32, logits.shape, 1)
    if masked:
        # Zero-padded vocab columns must never win the argmax.
        logits = jnp.where(col < (vocab_size - j * tv), logits, -jnp.inf)

    # Streaming top-1 over the vocab axis (first occurrence wins on ties,
    # matching torch.topk(k=1) / argmax semantics).
    tile_max = jnp.max(logits, axis=-1, keepdims=True)                  # (TM, 1)
    local_idx = jnp.min(jnp.where(logits == tile_max, col, tv),
                        axis=-1, keepdims=True)                         # (TM, 1)
    global_idx = local_idx + j * tv

    better = tile_max > mval_ref[...]
    mval_ref[...] = jnp.where(better, tile_max, mval_ref[...])
    midx_ref[...] = jnp.where(better, global_idx, midx_ref[...])

    @pl.when(j == pl.num_programs(1) - 1)
    def _():
        # torch.topk returns int64 indices; int32 is sufficient for any vocab.
        tok_ref[...] = midx_ref[...]


def lm_head_forward(hidden_states, ln_f_weight, lm_head_weight, *,
                    eps=1e-6, tm=None, tv=None):
    """LmHead: token = argmax_v( lm_head( rmsnorm(hidden_states) ) ).

    hidden_states:  (B, S, H) bf16
    ln_f_weight:    (H,)      bf16  RMSNorm gamma
    lm_head_weight: (V, H)    bf16  nn.Linear weight (no bias)
    returns:        (B, S, 1) int32 top-1 token ids
    """
    B, S, H = hidden_states.shape
    V, H2 = lm_head_weight.shape
    assert H2 == H
    N = B * S

    tm_t, tv_t, vmem_cap = _chip_defaults()
    if tm is None:
        tm = min(tm_t, _round_up(N, 8))
    if tv is None:
        tv = min(tv_t, _round_up(V, 128))

    # VMEM estimate for the main kernel: double-buffered xn / weight / output
    # blocks, scratch, and ~3 passes worth of (TM,TV) f32 logits temporaries.
    def _est(tm_, tv_):
        return (2 * tm_ * H * 2 + 2 * tv_ * H * 2 + 2 * tm_ * 4
                + tm_ * 8 + 3 * tm_ * tv_ * 4)

    while _est(tm, tv) > vmem_cap and tv > 128:
        tv = max(128, (tv // 2) // 128 * 128)
    while _est(tm, tv) > vmem_cap and tm > 8:
        tm = max(8, (tm // 2) // 8 * 8)

    n_pad = _round_up(N, tm)
    v_pad = _round_up(V, tv)
    masked = v_pad != V

    x2d = hidden_states.reshape(N, H)
    if n_pad != N:
        x2d = jnp.pad(x2d, ((0, n_pad - N), (0, 0)))
    gamma2d = ln_f_weight.reshape(1, H)

    # One-time weight layout transform (done once at load time in a real
    # deployment): transpose to (H, V) and zero-pad the vocab dimension.
    w_t = lm_head_weight.T
    if masked:
        w_t = jnp.pad(w_t, ((0, 0), (0, v_pad - V)))

    # ---- Stage 1: RMSNorm (small elementwise Pallas kernel) ----------------
    tn = min(256, tm)
    xn = pl.pallas_call(
        functools.partial(_rmsnorm_kernel, eps=eps),
        out_shape=jax.ShapeDtypeStruct((n_pad, H), hidden_states.dtype),
        grid_spec=pltpu.PrefetchScalarGridSpec(
            num_scalar_prefetch=0,
            grid=(n_pad // tn,),
            in_specs=[pl.BlockSpec((tn, H), lambda i: (i, 0)),
                      pl.BlockSpec((1, H), lambda i: (0, 0))],
            out_specs=pl.BlockSpec((tn, H), lambda i: (i, 0))),
        compiler_params=pltpu.CompilerParams(
            dimension_semantics=("parallel",)),
    )(x2d, gamma2d)

    # ---- Stage 2: streamed lm_head matmul + running argmax -----------------
    vmem_limit = int(min(vmem_cap, max(2 * _est(tm, tv), 32 << 20)))
    cost = pl.CostEstimate(
        flops=2 * n_pad * v_pad * H,
        transcendentals=0,
        bytes_accessed=(n_pad // tm) * v_pad * H * 2 + n_pad * H * 2 + n_pad * 4)

    kernel = functools.partial(_lm_head_kernel, vocab_size=V, masked=masked)
    tok = pl.pallas_call(
        kernel,
        out_shape=jax.ShapeDtypeStruct((n_pad, 1), jnp.int32),
        grid_spec=pltpu.PrefetchScalarGridSpec(
            num_scalar_prefetch=0,
            grid=(n_pad // tm, v_pad // tv),               # vocab (reduction) axis last
            in_specs=[
                pl.BlockSpec((tm, H), lambda i, j: (i, 0)),   # normalized hidden tile
                pl.BlockSpec((H, tv), lambda i, j: (0, j)),   # lm_head weight tile
            ],
            out_specs=pl.BlockSpec((tm, 1), lambda i, j: (i, 0)),
            scratch_shapes=[
                pltpu.VMEM((tm, 1), jnp.float32),             # running max logit
                pltpu.VMEM((tm, 1), jnp.int32),               # running argmax
            ]),
        compiler_params=pltpu.CompilerParams(
            dimension_semantics=("parallel", "arbitrary"),
            vmem_limit_bytes=vmem_limit),
        cost_estimate=cost,
    )(xn, w_t)

    return tok[:N].reshape(B, S, 1)


def _reference(hidden, gamma, w, eps):
    # Pure-JAX reference with the same math as Qwen: RMSNorm (f32 norm -> bf16
    # -> * gamma), bf16 matmul with f32 accumulation, topk(., 1) == argmax.
    xf = hidden.astype(jnp.float32)
    inv = jax.lax.rsqrt(jnp.mean(xf * xf, axis=-1, keepdims=True) + eps)
    xn = (xf * inv).astype(jnp.bfloat16) * gamma
    logits = jnp.einsum('bsh,vh->bsv', xn, w,
                        preferred_element_type=jnp.float32)
    return jnp.argmax(logits, axis=-1).astype(jnp.int32)[..., None]


if __name__ == "__main__":
    # Small deterministic config. V=200 is deliberately NOT a multiple of 128
    # so the vocab-padding + pad-column masking path is exercised.
    B, S, H, V = 2, 8, 32, 200
    eps = 1e-6

    key = jax.random.PRNGKey(0)
    kx, kg, kw = jax.random.split(key, 3)

    hidden = jax.random.normal(kx, (B, S, H), dtype=jnp.float32).astype(jnp.bfloat16)
    gamma = (1.0 + 0.1 * jax.random.normal(kg, (H,), dtype=jnp.float32)
             ).astype(jnp.bfloat16)
    w = (0.02 * jax.random.normal(kw, (V, H), dtype=jnp.float32)
         ).astype(jnp.bfloat16)

    # Test 1: random weights.
    tok = jax.block_until_ready(lm_head_forward(hidden, gamma, w, eps=eps))
    ref = _reference(hidden, gamma, w, eps)
    assert tok.shape == (B, S, 1) and tok.dtype == jnp.int32
    assert jnp.array_equal(tok, ref)

    # Test 2: all real logits strictly negative -> the zero-padded vocab
    # columns would (incorrectly) win without the -inf mask.
    hidden2 = jnp.abs(hidden.astype(jnp.float32)).astype(jnp.bfloat16)
    gamma2 = (jnp.abs(gamma.astype(jnp.float32)) + 0.5).astype(jnp.bfloat16)
    w2 = (-jnp.abs(w.astype(jnp.float32)) - 0.01).astype(jnp.bfloat16)
    tok2 = jax.block_until_ready(lm_head_forward(hidden2, gamma2, w2, eps=eps))
    ref2 = _reference(hidden2, gamma2, w2, eps)
    assert jnp.array_equal(tok2, ref2)

    print("KERNEL_OK")
</pallas_src>

<mosaic_0001>
module attributes {stable_mosaic.version = 11 : i64} {
  func.func @_rmsnorm_kernel(%arg0: i32, %arg1: memref<16x32xbf16, #tpu.memory_space<vmem>>, %arg2: memref<1x32xbf16, #tpu.memory_space<vmem>>, %arg3: memref<16x32xbf16, #tpu.memory_space<vmem>>) attributes {dimension_semantics = [#tpu.dimension_semantics<parallel>], iteration_bounds = array<i64: 1>, scalar_prefetch = 0 : i64, scratch_operands = 0 : i64, tpu.core_type = #tpu.core_type<tc>, window_params = [{transform_indices = @transform_0, window_bounds = array<i64: 16, 32>}, {pipeline_mode = #tpu.pipeline_mode<synchronous>, transform_indices = @transform_1, window_bounds = array<i64: 1, 32>}, {transform_indices = @transform_2, window_bounds = array<i64: 16, 32>}]} {
    %c0 = arith.constant 0 : index
    %c0_0 = arith.constant 0 : index
    %0 = vector.load %arg1[%c0, %c0_0] : memref<16x32xbf16, #tpu.memory_space<vmem>>, vector<16x32xbf16>
    %1 = arith.extf %0 : vector<16x32xbf16> to vector<16x32xf32>
    %2 = arith.mulf %1, %1 : vector<16x32xf32>
    %cst = arith.constant dense<0.000000e+00> : vector<16xf32>
    %3 = vector.multi_reduction <add>, %2, %cst [1] : vector<16x32xf32> to vector<16xf32>
    %4 = vector.shape_cast %3 : vector<16xf32> to vector<16x1xf32>
    %cst_1 = arith.constant 3.200000e+01 : f32
    %5 = vector.broadcast %cst_1 : f32 to vector<16x1xf32>
    %6 = arith.divf %4, %5 : vector<16x1xf32>
    %cst_2 = arith.constant 9.99999997E-7 : f32
    %7 = vector.broadcast %cst_2 : f32 to vector<16x1xf32>
    %8 = arith.addf %6, %7 : vector<16x1xf32>
    %9 = math.rsqrt %8 : vector<16x1xf32>
    %10 = vector.broadcast %9 : vector<16x1xf32> to vector<16x32xf32>
    %11 = arith.mulf %1, %10 : vector<16x32xf32>
    %12 = arith.truncf %11 : vector<16x32xf32> to vector<16x32xbf16>
    %c0_3 = arith.constant 0 : index
    %c0_4 = arith.constant 0 : index
    %13 = vector.load %arg2[%c0_3, %c0_4] : memref<1x32xbf16, #tpu.memory_space<vmem>>, vector<1x32xbf16>
    %14 = vector.broadcast %13 : vector<1x32xbf16> to vector<16x32xbf16>
    %15 = arith.mulf %12, %14 : vector<16x32xbf16>
    %c0_5 = arith.constant 0 : index
    %c0_6 = arith.constant 0 : index
    %16 = vector.load %arg3[%c0_5, %c0_6] : memref<16x32xbf16, #tpu.memory_space<vmem>>, vector<16x32xbf16>
    tpu.vector_store %arg3[%c0_5, %c0_6], %15 {strides = array<i32>} : memref<16x32xbf16, #tpu.memory_space<vmem>>, vector<16x32xbf16>,
    return
  }
  func.func @transform_0(%arg0: i32) -> (i32, i32) {
    %c0_i32 = arith.constant 0 : i32
    %c0_i32_0 = arith.constant 0 : i32
    return %arg0, %c0_i32 : i32, i32
  }
  func.func @transform_1(%arg0: i32) -> (i32, i32) {
    %c0_i32 = arith.constant 0 : i32
    %c0_i32_0 = arith.constant 0 : i32
    %c0_i32_1 = arith.constant 0 : i32
    return %c0_i32, %c0_i32_0 : i32, i32
  }
  func.func @transform_2(%arg0: i32) -> (i32, i32) {
    %c0_i32 = arith.constant 0 : i32
    %c0_i32_0 = arith.constant 0 : i32
    return %arg0, %c0_i32 : i32, i32
  }
}

</mosaic_0001>

<bundles_post_ra>
// kernel: tpu_custom_call.1
= control target key start
LH: loop header
LB: loop body
LE: loop exit
PB: predicated region body
PF: predicated region fallthrough
CT: control target
= control target key end

     0   :  { %7 = vsyncpa [#allocation3], 0  ;;  %s199_s0 = inlined_call_operand.hbm [shape: bf16[16,32], index: 0, kind: input, shape index: {}]   ;;  %s200_s1 = inlined_call_operand.vmem [shape: bf16[1,32], index: 1, kind: input, shape index: {}]   ;;  %s201_s2 = inlined_call_operand.hbm [shape: bf16[16,32], index: 2, kind: output, shape index: {}]  }
   0x1   :  { %8 = vsyncpa [#allocation4], 0  ;;  %s147_s9 = smov [#allocation2]   ;;  %s99_s13 = scalar_lea.hbm %s199_s0, 128 }
   0x2   :  { %s14_s10 = sshll.u32 %s147_s9, 4  ;;  %p100_p0 = scmp.ne.s32.totalorder %s199_s0, %s99_s13  ;;  %s15_s10 = int_to_ptr.vmem [resolvable:$true] %s14_s10 }
   0x3   :  { %p103_p1 = scmp.lt.u32.totalorder %s99_s13, %s199_s0 }
   0x5   :  { %p105_p2 = pnand %p103_p1, %p100_p0 }
   0x7   :  { %108 = shalt.err (!%p105_p2)
}
   0x8   :  { %s109_s18 = scalar_lea.vmem %s15_s10, 128  ;;  %p114_p4 = scmp.lt.s32.totalorder %s15_s10, %s15_s10 }
   0x9   :  { %p110_p3 = scmp.ne.s32.totalorder %s15_s10, %s109_s18  ;;  %p115_p5 = scmp.lt.s32.totalorder %s109_s18, %s109_s18 }
   0xb   :  { %p116_p6 = por %p115_p5, %p114_p4 }
   0xd   :  { %p117_p7 = pnand %p116_p6, %p110_p3 }
   0xf   :  { %120 = shalt.err (!%p117_p7)
}
  0x10   :  { %s148_s19 = smov 64   ;;  %s149_s20 = smov 4  }
  0x11   :  { %20 = dma.hbm_to_vmem [thread:$0]  %s199_s0, 128, %s15_s10, [#allocation3], %s148_s19, %s148_s19, %s149_s20  }
  0x12   :  { %143 = dma.done.wait [#allocation3], 128  }
  0x13   :  { %144 = vsyncadd [#allocation3], 4294967168  ;;  %v88_v0 = vld [vmem:[#allocation2] sm:$0xff]   ;;  %vm32_vm0 = vcmask 261120   ;;  %v53_v13 = vlaneseq  ;;  %s150_s24 = smov [#allocation5]   ;;  %vm65_vm1 = vcmask 257024  }
  0x14   :  { %v89_v1 = vunpack.c.l.bf16 %v88_v0  ;;  %v90_v2 = vunpack.c.h.bf16 %v88_v0  ;;  %v49_v15 = vld [vmem:[%s200_s1] sm:$0x1]  ;;  %s73_s25 = sshll.u32 %s150_s24, 4  ;;  %s74_s25 = int_to_ptr.vmem [resolvable:$true] %s73_s25 }
  0x15   :  { %v54_v14 = vshrl.u32 %v53_v13, 7  ;;  %v51_v16 = vpack.i.b16 %v49_v15, %v49_v15  ;;  %s121_s26 = scalar_lea.vmem %s74_s25, 128  ;;  %p126_p9 = scmp.lt.s32.totalorder %s74_s25, %s74_s25 }
  0x16   :  { %v30_v3 = vmul.f32 %v89_v1, %v89_v1  ;;  %v31_v4 = vmul.f32 %v90_v2, %v90_v2  ;;  %p122_p8 = scmp.ne.s32.totalorder %s74_s25, %s121_s26  ;;  %p127_p10 = scmp.lt.s32.totalorder %s121_s26, %s121_s26 }
  0x17   :  { %v55_v17 = vsub.s32 0, %v54_v14 }
  0x18   :  { %v33_v5 = vsel %vm32_vm0, %v30_v3, 0.0  ;;  %v36_v6 = vsel %vm32_vm0, %v31_v4, 0.0  ;;  %p128_p11 = por %p127_p10, %p126_p9 }
  0x19   :  { %34 = vadd.xlane.f32.xlu0 %v33_v5  ;;  %v56_v22 = vrot.slane %v51_v16, %v55_v17 }
  0x1a   :  { %p129_p12 = pnand %p128_p11, %p122_p8 }
  0x1d   :  { %37 = vadd.xlane.f32.xlu0 %v36_v6 }
  0xa6   :  { %v35_v7 = vpop.xlane.xlu0 %34 }
  0xa7   :  { %v40_v8 = vmul.f32 0.03125, %v35_v7 }
  0xa9   :  { %v42_v9 = vadd.f32 1e-06, %v40_v8 }
  0xaa   :  { %v38_v10 = vpop.xlane.xlu0 %37 }
  0xab   :  { %v41_v11 = vmul.f32 0.03125, %v38_v10  ;;  %95 = vrsqrt.f32 %v42_v9 }
  0xad   :  { %v43_v12 = vadd.f32 1e-06, %v41_v11 }
  0xaf   :  { %97 = vrsqrt.f32 %v43_v12 }
  0xb5   :  { %v96_v18 = vpop.eup %95 }
  0xb6   :  { %v46_v20 = vmul.f32 %v96_v18, %v89_v1 }
  0xb9   :  { %v98_v19 = vpop.eup %97 }
  0xba   :  { %v47_v21 = vmul.f32 %v98_v19, %v90_v2 }
  0xbc   :  { %v48_v23 = vpack.c.bf16 %v47_v21, %v46_v20 }
  0xbe   :  { %v57_v24 = vmul.bf16 %v56_v22, %v48_v23 }
  0xc0   :  { %v85_v25 = vcombine.low %v57_v24, %v57_v24  ;;  %v86_v26 = vcombine.high %v57_v24, %v57_v24 }
  0xc2   :  { %66 = vst.msk [vmem:[#allocation5] sm:$0xf] %vm65_vm1, %v85_v25  ;;  %67 = vst.msk [vmem:[#allocation5 + $0x4] sm:$0xf] %vm65_vm1, %v86_v26 }
  0xc3   :  { %132 = shalt.err (!%p129_p12)
}
  0xc4   :  { %s133_s28 = scalar_lea.hbm %s201_s2, 128 }
  0xc5   :  { %p134_p13 = scmp.ne.s32.totalorder %s201_s2, %s133_s28  ;;  %p137_p0 = scmp.lt.u32.totalorder %s133_s28, %s201_s2 }
  0xc7   :  { %p139_p1 = pnand %p137_p0, %p134_p13 }
  0xc9   :  { %142 = shalt.err (!%p139_p1)
}
  0xca   :  { %79 = dma.vmem_to_hbm [thread:$0]  %s74_s25, 128, %s201_s2, [#allocation4], %s148_s19, %s148_s19, %s149_s20  }
  0xcb   :  { %145 = dma.done.wait [#allocation4], 128  }
  0xcc   :  { %146 = vsyncadd [#allocation4], 4294967168 }
  0xcd   :  { %83 = vsyncpa [#allocation3], 1 }
  0xce   :  { %84 = vsyncpa [#allocation4], 1 }

</bundles_post_ra>
